<compile_context>
chip_gen: v5e
topology: v5e:2x2
jax: 0.10.0
libtpu: 0.0.40
codegen_flags: <defaults>
</compile_context>

<pallas_src>
import functools

import jax
import jax.numpy as jnp
from jax.experimental import pallas as pl
from jax.experimental.pallas import tpu as pltpu


_LANE_CANDIDATES = (1024, 512, 256, 128)
_VMEM_LIMIT_BYTES = 48 * 1024 * 1024
_SINGLE_BLOCK_MAX_BYTES = 8 * 1024 * 1024   # ragged fallback ceiling


def _act_quant_kernel(x_ref, o_ref, *, lo, inv_scale, out_scale, upper):
    """Elementwise Hardtanh clamp + uniform quantization.

    PyTorch semantics:
      unsigned: x = clamp(x, 0, clip);     b = 2**(-n)
      signed:   x = clamp(x, -clip, clip); b = 2**(1-n)
      then      x = min(round(x / (b*clip)) * b, 1-b) * clip
    rewritten with folded constants (bit-identical for power-of-two clip):
      x = min(round(max(x, lo) * inv_scale) * out_scale, upper)
      inv_scale = 1/(b*clip), out_scale = b*clip, upper = (1-b)*clip
    The upper Hardtanh clamp is redundant: min(..., upper) already bounds the
    top code, so only the lower clamp is emitted (1 fewer VALU op / element).
    """
    x = x_ref[...].astype(jnp.float32)
    x = jnp.maximum(x, lo)                     # Hardtanh lower bound
    x = jnp.round(x * inv_scale) * out_scale   # quantize (round-half-to-even)
    x = jnp.minimum(x, upper)                  # clamp top code
    o_ref[...] = x.astype(o_ref.dtype)


def _device_is_v7x():
    try:
        return "v7" in jax.devices()[0].device_kind.lower()
    except Exception:
        return False


def act_quantizer_forward(x, *, clip_init, num_bits, signed, tile_rows=None):
    """Pallas implementation of ActQuantizer.forward.

    x: float array (e.g. NCHW). Returns an array of the same shape/dtype.
    NOTE: the op is purely functional here; the PyTorch module mutates its
    input in place — donate x at the jit boundary if that footprint matters.
    """
    orig_shape = x.shape
    orig_dtype = x.dtype
    total = int(x.size)
    if total == 0:
        return x

    clip = float(clip_init)
    n = int(num_bits)
    if signed:
        b = 2.0 ** (1 - n)
        lo = -clip
    else:
        b = 2.0 ** (-n)
        lo = 0.0
    inv_scale = 1.0 / (b * clip)
    out_scale = b * clip
    upper = (1.0 - b) * clip

    kernel = functools.partial(
        _act_quant_kernel,
        lo=lo, inv_scale=inv_scale, out_scale=out_scale, upper=upper,
    )

    is_v7x = _device_is_v7x()
    if tile_rows is None:
        # ~4 MiB f32 blocks on v5e/v6e (already ~85% of HBM roofline there);
        # ~8 MiB on v7x where the higher bandwidth makes step overhead matter.
        tile_rows = 2048 if is_v7x else 1024
    target_block_elems = int(tile_rows) * 1024

    x_flat = x.reshape(-1)

    def _tiled_call(x2d, rows, lane, tile_r, semantics):
        return pl.pallas_call(
            kernel,
            out_shape=jax.ShapeDtypeStruct((rows, lane), orig_dtype),
            grid_spec=pltpu.PrefetchScalarGridSpec(
                num_scalar_prefetch=0,
                grid=(pl.cdiv(rows, tile_r),),
                in_specs=[pl.BlockSpec((tile_r, lane), lambda i: (i, 0))],
                out_specs=pl.BlockSpec((tile_r, lane), lambda i: (i, 0)),
            ),
            compiler_params=pltpu.CompilerParams(
                dimension_semantics=semantics,
                vmem_limit_bytes=_VMEM_LIMIT_BYTES,
            ),
        )(x2d)

    # ---- Fast path: lane-dense 2-D slab, zero padding / zero extra copies. ----
    lane = next((l for l in _LANE_CANDIDATES if total % l == 0), None)
    if lane is not None:
        rows = total // lane
        # Keep block byte-size ~constant regardless of lane width; each block
        # spans the full last dim -> contiguous DMA burst.
        tile_r = min(rows, max(8, target_block_elems // lane))
        n_blocks = pl.cdiv(rows, tile_r)
        x2d = x_flat.reshape(rows, lane)

        if is_v7x and n_blocks >= 2:
            # Shard the row grid across both v7x TensorCores so both cores'
            # DMA queues stream HBM. Fall back if lowering rejects it.
            try:
                out2d = _tiled_call(x2d, rows, lane, tile_r,
                                    (pltpu.CORE_PARALLEL,))
            except Exception:
                out2d = _tiled_call(x2d, rows, lane, tile_r, ("parallel",))
        else:
            out2d = _tiled_call(x2d, rows, lane, tile_r, ("parallel",))
        return out2d.reshape(orig_shape)

    # ---- Ragged element count (not a multiple of 128): rare for real NCHW. ----
    if total * jnp.dtype(orig_dtype).itemsize <= _SINGLE_BLOCK_MAX_BYTES:
        # Single full-extent block; Mosaic masks the internal (8,128) padding,
        # so there is still no wrapper-side pad/slice HBM round-trip.
        x2d = x_flat.reshape(1, total)
        out2d = pl.pallas_call(
            kernel,
            out_shape=jax.ShapeDtypeStruct((1, total), orig_dtype),
            grid_spec=pltpu.PrefetchScalarGridSpec(
                num_scalar_prefetch=0,
                grid=(1,),
                in_specs=[pl.BlockSpec((1, total), lambda i: (0, 0))],
                out_specs=pl.BlockSpec((1, total), lambda i: (0, 0)),
            ),
            compiler_params=pltpu.CompilerParams(
                dimension_semantics=("arbitrary",),
                vmem_limit_bytes=_VMEM_LIMIT_BYTES,
            ),
        )(x2d)
        return out2d.reshape(orig_shape)

    # TODO(synk): very large inputs whose element count is not a multiple of
    # 128 still take a padded round-trip (two extra HBM passes); real NCHW
    # activations never hit this branch.
    lane = 128
    padded = pl.cdiv(total, lane) * lane
    x_pad = jnp.pad(x_flat, (0, padded - total))
    rows = padded // lane
    tile_r = min(rows, max(8, target_block_elems // lane))
    out2d = _tiled_call(x_pad.reshape(rows, lane), rows, lane, tile_r,
                        ("parallel",))
    return out2d.reshape(-1)[:total].reshape(orig_shape)


def _reference(x, clip, num_bits, signed):
    """Pure-JAX reference mirroring the PyTorch code, for sanity checking."""
    x = jnp.asarray(x, jnp.float32)
    if signed:
        x = jnp.clip(x, -clip, clip)
        b = 2.0 ** (1 - num_bits)
    else:
        x = jnp.clip(x, 0.0, clip)
        b = 2.0 ** (-num_bits)
    x = jnp.round(x / (b * clip)) * b
    x = jnp.minimum(x, 1.0 - b)
    return x * clip


if __name__ == "__main__":
    # Module config (deterministic, no checkpoint): clip_init=1.0, num_bits=4
    clip_init = 1.0
    num_bits = 4

    key = jax.random.PRNGKey(0)
    # NCHW input, batch=2, channels=4, spatial=16x16 (2048 elems -> lane=1024)
    x = jax.random.normal(key, (2, 4, 16, 16), dtype=jnp.float32) * 1.5

    # Unsigned variant
    y_u = jax.block_until_ready(
        act_quantizer_forward(x, clip_init=clip_init, num_bits=num_bits,
                              signed=False))
    ref_u = _reference(x, clip_init, num_bits, False)
    assert y_u.shape == x.shape and y_u.dtype == x.dtype
    assert jnp.allclose(y_u, ref_u, atol=1e-6), "unsigned mismatch"

    # Signed variant
    y_s = jax.block_until_ready(
        act_quantizer_forward(x, clip_init=clip_init, num_bits=num_bits,
                              signed=True))
    ref_s = _reference(x, clip_init, num_bits, True)
    assert jnp.allclose(y_s, ref_s, atol=1e-6), "signed mismatch"

    # Ragged element count (105 elems, not a multiple of 128) -> single-block
    # fallback path, still no wrapper-side pad/slice.
    x_r = jax.random.normal(jax.random.PRNGKey(1), (3, 5, 7),
                            dtype=jnp.float32) * 1.5
    y_r = jax.block_until_ready(
        act_quantizer_forward(x_r, clip_init=clip_init, num_bits=num_bits,
                              signed=True))
    ref_r = _reference(x_r, clip_init, num_bits, True)
    assert jnp.allclose(y_r, ref_r, atol=1e-6), "ragged mismatch"

    print("KERNEL_OK")
</pallas_src>

<mosaic_0001>
module attributes {stable_mosaic.version = 11 : i64} {
  func.func @_act_quant_kernel(%arg0: i32, %arg1: memref<2x1024xf32, #tpu.memory_space<vmem>>, %arg2: memref<2x1024xf32, #tpu.memory_space<vmem>>) attributes {dimension_semantics = [#tpu.dimension_semantics<parallel>], iteration_bounds = array<i64: 1>, scalar_prefetch = 0 : i64, scratch_operands = 0 : i64, tpu.core_type = #tpu.core_type<tc>, window_params = [{transform_indices = @transform_0, window_bounds = array<i64: 2, 1024>}, {transform_indices = @transform_1, window_bounds = array<i64: 2, 1024>}]} {
    %c0 = arith.constant 0 : index
    %c0_0 = arith.constant 0 : index
    %0 = vector.load %arg1[%c0, %c0_0] : memref<2x1024xf32, #tpu.memory_space<vmem>>, vector<2x1024xf32>
    %cst = arith.constant 0.000000e+00 : f32
    %1 = vector.broadcast %cst : f32 to vector<2x1024xf32>
    %2 = arith.maximumf %0, %1 : vector<2x1024xf32>
    %cst_1 = arith.constant 1.600000e+01 : f32
    %3 = vector.broadcast %cst_1 : f32 to vector<2x1024xf32>
    %4 = arith.mulf %2, %3 : vector<2x1024xf32>
    %5 = math.roundeven %4 : vector<2x1024xf32>
    %cst_2 = arith.constant 6.250000e-02 : f32
    %6 = vector.broadcast %cst_2 : f32 to vector<2x1024xf32>
    %7 = arith.mulf %5, %6 : vector<2x1024xf32>
    %cst_3 = arith.constant 9.375000e-01 : f32
    %8 = vector.broadcast %cst_3 : f32 to vector<2x1024xf32>
    %9 = arith.minimumf %7, %8 : vector<2x1024xf32>
    %c0_4 = arith.constant 0 : index
    %c0_5 = arith.constant 0 : index
    %10 = vector.load %arg2[%c0_4, %c0_5] : memref<2x1024xf32, #tpu.memory_space<vmem>>, vector<2x1024xf32>
    tpu.vector_store %arg2[%c0_4, %c0_5], %9 {strides = array<i32>} : memref<2x1024xf32, #tpu.memory_space<vmem>>, vector<2x1024xf32>,
    return
  }
  func.func @transform_0(%arg0: i32) -> (i32, i32) {
    %c0_i32 = arith.constant 0 : i32
    %c0_i32_0 = arith.constant 0 : i32
    return %arg0, %c0_i32 : i32, i32
  }
  func.func @transform_1(%arg0: i32) -> (i32, i32) {
    %c0_i32 = arith.constant 0 : i32
    %c0_i32_0 = arith.constant 0 : i32
    return %arg0, %c0_i32 : i32, i32
  }
}

</mosaic_0001>

<bundles_post_ra>
// kernel: tpu_custom_call.1
= control target key start
LH: loop header
LB: loop body
LE: loop exit
PB: predicated region body
PF: predicated region fallthrough
CT: control target
= control target key end

     0   :  { %6 = vsyncpa [#allocation3], 0  ;;  %s142_s0 = inlined_call_operand.hbm [shape: f32[2,1024], index: 0, kind: input, shape index: {}]   ;;  %s143_s1 = inlined_call_operand.hbm [shape: f32[2,1024], index: 1, kind: output, shape index: {}]  }
   0x1   :  { %7 = vsyncpa [#allocation4], 0  ;;  %s13_s8 = sshll.u32 %s142_s0, 4  ;;  %s124_s9 = smov [#allocation2]   ;;  %s14_s8 = int_to_ptr.hbm [resolvable:$true] %s13_s8 }
   0x2   :  { %s15_s10 = sshll.u32 %s124_s9, 4  ;;  %s16_s10 = int_to_ptr.vmem [resolvable:$true] %s15_s10 }
   0x3   :  { %18 = dma.hbm_to_vmem [thread:$0]  %s14_s8, 256, %s16_s10, [#allocation3]  }
   0x4   :  { %120 = dma.done.wait [#allocation3], 256  }
   0x5   :  { %121 = vsyncadd [#allocation3], 4294967040  ;;  %v23_v0 = vld [vmem:[#allocation2] sm:$0xff]  ;;  %v24_v1 = vld [vmem:[#allocation2 + $0x8] sm:$0xff]  ;;  %s125_s0 = smov [#allocation5]   ;;  %s44_s14 = sshll.u32 %s143_s1, 4  ;;  %s45_s14 = int_to_ptr.hbm [resolvable:$true] %s44_s14 }
   0x6   :  { %v25_v2 = vmax.f32 %v23_v0, 0.0  ;;  %v26_v3 = vmax.f32 %v24_v1, 0.0  ;;  %s42_s11 = sshll.u32 %s125_s0, 4  ;;  %s43_s11 = int_to_ptr.vmem [resolvable:$true] %s42_s11 }
   0x8   :  { %v27_v4 = vmul.f32 16.0, %v25_v2  ;;  %v28_v5 = vmul.f32 16.0, %v26_v3 }
   0xa   :  { %v56_v6 = vcvt.f32.s32 %v27_v4  ;;  %v54_v7 = vand.u32 2147483647, %v27_v4  ;;  %v64_v8 = vcvt.f32.s32 %v28_v5  ;;  %v59_v10 = vand.u32 2147483648, %v27_v4 }
   0xb   :  { %v62_v11 = vand.u32 2147483647, %v28_v5  ;;  %v67_v13 = vand.u32 2147483648, %v28_v5 }
   0xc   :  { %v57_v9 = vcvt.s32.f32 %v56_v6  ;;  %v65_v12 = vcvt.s32.f32 %v64_v8  ;;  %vm55_vm0 = vcmp.lt.f32.partialorder %v54_v7, 8388608.0 }
   0xd   :  { %vm63_vm1 = vcmp.lt.f32.partialorder %v62_v11, 8388608.0 }
   0xe   :  { %v58_v14 = vand.u32 2147483647, %v57_v9  ;;  %v66_v15 = vand.u32 2147483647, %v65_v12 }
  0x10   :  { %v60_v16 = vor.u32 %v59_v10, %v58_v14  ;;  %v68_v17 = vor.u32 %v67_v13, %v66_v15 }
  0x12   :  { %v61_v18 = vsel %vm55_vm0, %v60_v16, %v27_v4  ;;  %v69_v20 = vsel %vm63_vm1, %v68_v17, %v28_v5 }
  0x13   :  { %v31_v19 = vmul.f32 0.0625, %v61_v18  ;;  %v32_v21 = vmul.f32 0.0625, %v69_v20 }
  0x15   :  { %v33_v22 = vmin.f32 %v31_v19, 0.9375  ;;  %v34_v23 = vmin.f32 %v32_v21, 0.9375 }
  0x17   :  { %35 = vst [vmem:[#allocation5] sm:$0xff] %v33_v22 }
  0x18   :  { %36 = vst [vmem:[#allocation5 + $0x8] sm:$0xff] %v34_v23 }
  0x19   :  { %47 = dma.vmem_to_hbm [thread:$0]  %s43_s11, 256, %s45_s14, [#allocation4]  }
  0x1a   :  { %122 = dma.done.wait [#allocation4], 256  }
  0x1b   :  { %123 = vsyncadd [#allocation4], 4294967040 }
  0x1c   :  { %52 = vsyncpa [#allocation3], 1 }
  0x1d   :  { %53 = vsyncpa [#allocation4], 1 }

</bundles_post_ra>
